<compile_context>
chip_gen: v6e
topology: v6e:2x2x1
jax: 0.10.0
libtpu: 0.0.40
codegen_flags: <defaults>
</compile_context>

<pallas_src>
import functools

import jax
import jax.numpy as jnp
from jax.experimental import pallas as pl
from jax.experimental.pallas import tpu as pltpu

IGNORE_INDEX = 255.0
ALPHA = 1.0
GAMMA = 2.0

LANES = 128
MAX_TILE_ROWS = 8192   # (8192, 128) f32 block = 4 MiB per input per grid step
CHUNK_ROWS = 512       # compute sub-slice inside a DMA block (~256 KiB f32 temps)
ACC_ROWS = 32          # accumulator height: 4 independent vreg add chains


def _focal_kernel(preds_ref, targets_ref, *out_refs, alpha, gamma, ignore_index,
                  rows, tile_rows, chunk_rows, num_blocks, compute_count,
                  has_partial_block):
    sum_ref = out_refs[0]
    cnt_ref = out_refs[1] if compute_count else None
    num_chunks = tile_rows // chunk_rows
    block_idx = pl.program_id(0)
    block_row0 = block_idx * tile_rows

    def chunk_stats(c, needs_mask):
        """Focal-loss partial sums of one chunk, reduced to (ACC_ROWS, LANES)."""
        if isinstance(c, int):
            start = c * chunk_rows
        else:
            start = pl.multiple_of(c * chunk_rows, chunk_rows)
        x = preds_ref[pl.ds(start, chunk_rows), :].astype(jnp.float32)
        t = targets_ref[pl.ds(start, chunk_rows), :].astype(jnp.float32)
        valid = t != jnp.float32(ignore_index)
        if needs_mask:
            # Only the last (partial) block pays this: mask rows past the array.
            row = jax.lax.broadcasted_iota(jnp.int32, (chunk_rows, LANES), 0)
            in_range = (block_row0 + start + row) < rows
            valid = jnp.logical_and(valid, in_range)
        # Numerically stable BCE-with-logits (== F.binary_cross_entropy_with_logits):
        #   ce = max(x, 0) - x*t + log(1 + exp(-|x|))
        ce = jnp.maximum(x, 0.0) - x * t + jnp.log1p(jnp.exp(-jnp.abs(x)))
        pt = jnp.exp(-ce)
        w = 1.0 - pt
        if gamma == 2.0:        # default: avoid the exp/log pair of a float pow
            mod = w * w
        elif gamma == 1.0:
            mod = w
        else:
            mod = w ** gamma    # generic fallback
        fl = mod * ce
        if alpha != 1.0:
            fl = alpha * fl
        # Per-lane select: any NaN/inf from masked/garbage lanes never leaks.
        fl = jnp.where(valid, fl, 0.0)
        s = jnp.sum(fl.reshape(chunk_rows // ACC_ROWS, ACC_ROWS, LANES), axis=0)
        if compute_count:
            cnt = valid.astype(jnp.float32)
            cs = jnp.sum(cnt.reshape(chunk_rows // ACC_ROWS, ACC_ROWS, LANES), axis=0)
            return (s, cs)
        return (s,)

    def process(needs_mask):
        if num_chunks == 1:
            stats = chunk_stats(0, needs_mask)
        else:
            def body(c, carry):
                new = chunk_stats(c, needs_mask)
                return tuple(a + b for a, b in zip(carry, new))
            zeros = (jnp.zeros((ACC_ROWS, LANES), jnp.float32),) * (2 if compute_count else 1)
            stats = jax.lax.fori_loop(0, num_chunks, body, zeros)
        sum_ref[0] = stats[0]
        if compute_count:
            cnt_ref[0] = stats[1]

    if not has_partial_block:
        process(False)                 # every block is full: no bounds mask at all
    elif num_blocks == 1:
        process(True)                  # single (partial) block: always mask
    else:
        is_last = block_idx == num_blocks - 1

        @pl.when(jnp.logical_not(is_last))
        def _():
            process(False)             # interior full blocks: cheap valid-mask only

        @pl.when(is_last)
        def _():
            process(True)              # last partial block: add the row-iota mask


def focal_loss(preds, targets, *, reduction="mean", ignore_index=IGNORE_INDEX,
               alpha=ALPHA, gamma=GAMMA):
    """Pallas implementation of FocalLoss.forward (weight=None)."""
    assert preds.shape == targets.shape
    n = preds.size
    compute_count = (reduction == "mean")

    preds_flat = preds.reshape(-1)
    targets_flat = targets.reshape(-1)

    # Pad only when needed: lane alignment (n % 128 != 0) or tiny inputs
    # (< ACC_ROWS rows).  Padded targets get ignore_index -> contribute nothing.
    min_elems = ACC_ROWS * LANES
    pad = (-n) % LANES
    if n + pad < min_elems:
        pad = min_elems - n
    if pad:
        preds_flat = jnp.pad(preds_flat, (0, pad))
        targets_flat = jnp.pad(
            targets_flat, (0, pad),
            constant_values=targets_flat.dtype.type(ignore_index))

    rows = preds_flat.size // LANES
    preds2d = preds_flat.reshape(rows, LANES)
    targets2d = targets_flat.reshape(rows, LANES)

    # Tile sizing: large DMA blocks, always a multiple of the compute chunk so
    # the in-kernel loop divides evenly.  The last block may be partial and is
    # masked in-kernel (no data padding).
    if rows >= CHUNK_ROWS:
        tile_rows = min(MAX_TILE_ROWS, (rows // CHUNK_ROWS) * CHUNK_ROWS)
        chunk_rows = CHUNK_ROWS
    else:
        tile_rows = (rows // ACC_ROWS) * ACC_ROWS
        chunk_rows = tile_rows
    num_blocks = pl.cdiv(rows, tile_rows)
    has_partial_block = (rows % tile_rows) != 0

    kernel = functools.partial(
        _focal_kernel, alpha=float(alpha), gamma=float(gamma),
        ignore_index=float(ignore_index), rows=rows, tile_rows=tile_rows,
        chunk_rows=chunk_rows, num_blocks=num_blocks,
        compute_count=compute_count, has_partial_block=has_partial_block)

    part_shape = jax.ShapeDtypeStruct((num_blocks, ACC_ROWS, LANES), jnp.float32)
    part_spec = pl.BlockSpec((1, ACC_ROWS, LANES), lambda j: (j, 0, 0))
    n_out = 2 if compute_count else 1

    outs = pl.pallas_call(
        kernel,
        out_shape=tuple([part_shape] * n_out),
        grid_spec=pltpu.PrefetchScalarGridSpec(
            num_scalar_prefetch=0,
            grid=(num_blocks,),
            in_specs=[
                pl.BlockSpec((tile_rows, LANES), lambda j: (j, 0)),
                pl.BlockSpec((tile_rows, LANES), lambda j: (j, 0)),
            ],
            out_specs=[part_spec] * n_out,
        ),
        compiler_params=pltpu.CompilerParams(
            # Fully parallel over blocks: each step owns its own output slab, so
            # v7x's two TensorCores can split the axis; on single-TC v5e/v6e it
            # is just a serial loop with no duplicated work.
            # TODO(synk): verify on v7x xprof that "parallel" shards across both
            # TCs; switch to pltpu.CORE_PARALLEL if it does not.
            dimension_semantics=("parallel",),
            # 2 inputs x 2 pipeline buffers x 4 MiB = 16 MiB of I/O VMEM plus
            # small chunked temps; 48 MiB is safe on every generation
            # (v7x physical VMEM is 64 MiB).
            vmem_limit_bytes=48 * 1024 * 1024,
        ),
    )(preds2d, targets2d)

    total = jnp.sum(outs[0])
    if reduction == "mean":
        # Note: count == 0 (all ignore_index) divides by zero, matching the ref.
        return total / jnp.sum(outs[1])
    return total


def _focal_loss_ref(preds, targets, *, reduction="mean",
                    ignore_index=IGNORE_INDEX, alpha=ALPHA, gamma=GAMMA):
    """Pure-JAX reference mirroring the PyTorch module."""
    preds = preds.reshape(-1).astype(jnp.float32)
    targets = targets.reshape(-1).astype(jnp.float32)
    valid = targets != ignore_index
    tf = jnp.where(valid, targets, 0.0)
    ce = jnp.maximum(preds, 0.0) - preds * tf + jnp.log1p(jnp.exp(-jnp.abs(preds)))
    pt = jnp.exp(-ce)
    fl = alpha * (1.0 - pt) ** gamma * ce
    fl = jnp.where(valid, fl, 0.0)
    if reduction == "mean":
        return jnp.sum(fl) / jnp.sum(valid.astype(jnp.float32))
    return jnp.sum(fl)


if __name__ == "__main__":
    key = jax.random.PRNGKey(0)
    k1, k2, k3, k4, k5, k6 = jax.random.split(key, 6)

    # Primary test: NCHW shapes matching the PyTorch convention.
    B, C, H, W = 2, 4, 16, 16
    preds = jax.random.normal(k1, (B, C, H, W), dtype=jnp.float32)
    labels = jax.random.bernoulli(k2, 0.5, (B, C, H, W)).astype(jnp.float32)
    ignore_mask = jax.random.bernoulli(k3, 0.1, (B, C, H, W))
    targets = jnp.where(ignore_mask, jnp.float32(IGNORE_INDEX), labels)

    out_mean = jax.block_until_ready(focal_loss(preds, targets, reduction="mean"))
    out_sum = jax.block_until_ready(focal_loss(preds, targets, reduction="sum"))
    ref_mean = _focal_loss_ref(preds, targets, reduction="mean")
    ref_sum = _focal_loss_ref(preds, targets, reduction="sum")
    assert jnp.allclose(out_mean, ref_mean, rtol=1e-5, atol=1e-5), (out_mean, ref_mean)
    assert jnp.allclose(out_sum, ref_sum, rtol=1e-5, atol=1e-5), (out_sum, ref_sum)

    # Secondary test: odd size exercising lane padding, multiple blocks and the
    # masked partial-block path.
    preds2 = jax.random.normal(k4, (1, 1, 100, 60), dtype=jnp.float32)
    labels2 = jax.random.bernoulli(k5, 0.5, (1, 1, 100, 60)).astype(jnp.float32)
    ignore2 = jax.random.bernoulli(k6, 0.1, (1, 1, 100, 60))
    targets2 = jnp.where(ignore2, jnp.float32(IGNORE_INDEX), labels2)

    out2 = jax.block_until_ready(focal_loss(preds2, targets2, reduction="mean"))
    ref2 = _focal_loss_ref(preds2, targets2, reduction="mean")
    assert jnp.allclose(out2, ref2, rtol=1e-5, atol=1e-5), (out2, ref2)

    print("KERNEL_OK")
</pallas_src>

<mosaic_0001>
module attributes {stable_mosaic.version = 11 : i64} {
  func.func @_focal_kernel(%arg0: i32, %arg1: memref<32x128xf32, #tpu.memory_space<vmem>>, %arg2: memref<32x128xf32, #tpu.memory_space<vmem>>, %arg3: memref<1x32x128xf32, #tpu.memory_space<vmem>>, %arg4: memref<1x32x128xf32, #tpu.memory_space<vmem>>) attributes {dimension_semantics = [#tpu.dimension_semantics<parallel>], iteration_bounds = array<i64: 1>, scalar_prefetch = 0 : i64, scratch_operands = 0 : i64, tpu.core_type = #tpu.core_type<tc>, window_params = [{transform_indices = @transform_0, window_bounds = array<i64: 32, 128>}, {transform_indices = @transform_1, window_bounds = array<i64: 32, 128>}, {transform_indices = @transform_2, window_bounds = array<i64: 1, 32, 128>}, {transform_indices = @transform_3, window_bounds = array<i64: 1, 32, 128>}]} {
    %c0 = arith.constant 0 : index
    %c0_0 = arith.constant 0 : index
    %0 = vector.load %arg1[%c0, %c0_0] : memref<32x128xf32, #tpu.memory_space<vmem>>, vector<32x128xf32>
    %c0_1 = arith.constant 0 : index
    %c0_2 = arith.constant 0 : index
    %1 = vector.load %arg2[%c0_1, %c0_2] : memref<32x128xf32, #tpu.memory_space<vmem>>, vector<32x128xf32>
    %cst = arith.constant 2.550000e+02 : f32
    %2 = vector.broadcast %cst : f32 to vector<32x128xf32>
    %3 = arith.cmpf one, %1, %2 : vector<32x128xf32>
    %cst_3 = arith.constant 0.000000e+00 : f32
    %4 = vector.broadcast %cst_3 : f32 to vector<32x128xf32>
    %5 = arith.maximumf %0, %4 : vector<32x128xf32>
    %6 = arith.mulf %0, %1 : vector<32x128xf32>
    %7 = arith.subf %5, %6 : vector<32x128xf32>
    %8 = math.absf %0 : vector<32x128xf32>
    %cst_4 = arith.constant 0.000000e+00 : f32
    %9 = vector.broadcast %cst_4 : f32 to vector<32x128xf32>
    %10 = arith.subf %9, %8 : vector<32x128xf32>
    %11 = math.exp %10 : vector<32x128xf32>
    %12 = math.log1p %11 : vector<32x128xf32>
    %13 = arith.addf %7, %12 : vector<32x128xf32>
    %cst_5 = arith.constant 0.000000e+00 : f32
    %14 = vector.broadcast %cst_5 : f32 to vector<32x128xf32>
    %15 = arith.subf %14, %13 : vector<32x128xf32>
    %16 = math.exp %15 : vector<32x128xf32>
    %cst_6 = arith.constant 1.000000e+00 : f32
    %17 = vector.broadcast %cst_6 : f32 to vector<32x128xf32>
    %18 = arith.subf %17, %16 : vector<32x128xf32>
    %19 = arith.mulf %18, %18 : vector<32x128xf32>
    %20 = arith.mulf %19, %13 : vector<32x128xf32>
    %cst_7 = arith.constant 0.000000e+00 : f32
    %21 = vector.broadcast %cst_7 : f32 to vector<32x128xf32>
    %22 = arith.select %3, %20, %21 : vector<32x128xi1>, vector<32x128xf32>
    %23 = vector.shape_cast %22 : vector<32x128xf32> to vector<1x32x128xf32>
    %cst_8 = arith.constant dense<0.000000e+00> : vector<32x128xf32>
    %24 = vector.multi_reduction <add>, %23, %cst_8 [0] : vector<1x32x128xf32> to vector<32x128xf32>
    %25 = arith.extui %3 : vector<32x128xi1> to vector<32x128xi32>
    %26 = arith.sitofp %25 : vector<32x128xi32> to vector<32x128xf32>
    %27 = vector.shape_cast %26 : vector<32x128xf32> to vector<1x32x128xf32>
    %cst_9 = arith.constant dense<0.000000e+00> : vector<32x128xf32>
    %28 = vector.multi_reduction <add>, %27, %cst_9 [0] : vector<1x32x128xf32> to vector<32x128xf32>
    %c0_10 = arith.constant 0 : index
    %c0_11 = arith.constant 0 : index
    %c0_12 = arith.constant 0 : index
    %29 = vector.load %arg3[%c0_10, %c0_11, %c0_12] : memref<1x32x128xf32, #tpu.memory_space<vmem>>, vector<1x32x128xf32>
    %30 = vector.shape_cast %29 : vector<1x32x128xf32> to vector<32x128xf32>
    %31 = vector.shape_cast %24 : vector<32x128xf32> to vector<1x32x128xf32>
    tpu.vector_store %arg3[%c0_10, %c0_11, %c0_12], %31 {strides = array<i32>} : memref<1x32x128xf32, #tpu.memory_space<vmem>>, vector<1x32x128xf32>,
    %c0_13 = arith.constant 0 : index
    %c0_14 = arith.constant 0 : index
    %c0_15 = arith.constant 0 : index
    %32 = vector.load %arg4[%c0_13, %c0_14, %c0_15] : memref<1x32x128xf32, #tpu.memory_space<vmem>>, vector<1x32x128xf32>
    %33 = vector.shape_cast %32 : vector<1x32x128xf32> to vector<32x128xf32>
    %34 = vector.shape_cast %28 : vector<32x128xf32> to vector<1x32x128xf32>
    tpu.vector_store %arg4[%c0_13, %c0_14, %c0_15], %34 {strides = array<i32>} : memref<1x32x128xf32, #tpu.memory_space<vmem>>, vector<1x32x128xf32>,
    return
  }
  func.func @transform_0(%arg0: i32) -> (i32, i32) {
    %c0_i32 = arith.constant 0 : i32
    %c0_i32_0 = arith.constant 0 : i32
    return %arg0, %c0_i32 : i32, i32
  }
  func.func @transform_1(%arg0: i32) -> (i32, i32) {
    %c0_i32 = arith.constant 0 : i32
    %c0_i32_0 = arith.constant 0 : i32
    return %arg0, %c0_i32 : i32, i32
  }
  func.func @transform_2(%arg0: i32) -> (i32, i32, i32) {
    %c0_i32 = arith.constant 0 : i32
    %c0_i32_0 = arith.constant 0 : i32
    %c0_i32_1 = arith.constant 0 : i32
    return %arg0, %c0_i32, %c0_i32_0 : i32, i32, i32
  }
  func.func @transform_3(%arg0: i32) -> (i32, i32, i32) {
    %c0_i32 = arith.constant 0 : i32
    %c0_i32_0 = arith.constant 0 : i32
    %c0_i32_1 = arith.constant 0 : i32
    return %arg0, %c0_i32, %c0_i32_0 : i32, i32, i32
  }
}

</mosaic_0001>

<bundles_post_ra>
// kernel: tpu_custom_call.1
= control target key start
LH: loop header
LB: loop body
LE: loop exit
PB: predicated region body
PF: predicated region fallthrough
CT: control target
= control target key end

     0   :  { %9 = vsyncpa [#allocation3], 0  ;;  %s435_s0 = inlined_call_operand.hbm [shape: f32[32,128], index: 0, kind: input, shape index: {}]   ;;  %s436_s1 = inlined_call_operand.hbm [shape: f32[32,128], index: 1, kind: input, shape index: {}]   ;;  %s437_s2 = inlined_call_operand.hbm [shape: f32[1,32,128], index: 2, kind: output, shape index: {0}]   ;;  %s438_s3 = inlined_call_operand.hbm [shape: f32[1,32,128], index: 3, kind: output, shape index: {1}]  }
   0x1   :  { %10 = vsyncpa [#allocation6], 0 }
   0x2   :  { %11 = vsyncpa [#allocation4], 0 }
   0x3   :  { %12 = vsyncpa [#allocation9], 0  ;;  %s332_s12 = smov [#allocation2]  }
   0x4   :  { %s18_s13 = sshll.u32 %s332_s12, 4  ;;  %s19_s13 = int_to_ptr.vmem [resolvable:$true] %s18_s13 }
   0x5   :  { %s252_s14 = scalar_lea.vmem %s19_s13, 512  ;;  %p257_p1 = scmp.lt.s32.totalorder %s19_s13, %s19_s13 }
   0x6   :  { %p253_p0 = scmp.ne.s32.totalorder %s19_s13, %s252_s14  ;;  %p258_p2 = scmp.lt.s32.totalorder %s252_s14, %s252_s14 }
   0x8   :  { %p259_p3 = por %p258_p2, %p257_p1 }
   0xa   :  { %p260_p4 = pnand %p259_p3, %p253_p0 }
   0xc   :  { %263 = shalt.err (!%p260_p4)
}
   0xd   :  { %s333_s15 = smov 128   ;;  %s334_s16 = smov 8  }
   0xe   :  { %24 = dma.hbm_to_vmem [thread:$0]  %s435_s0, 512, %s19_s13, [#allocation3], %s333_s15, %s333_s15, %s334_s16  }
   0xf   :  { %s335_s19 = smov [#allocation5]  }
  0x10   :  { %s30_s20 = sshll.u32 %s335_s19, 4  ;;  %s31_s20 = int_to_ptr.vmem [resolvable:$true] %s30_s20 }
  0x11   :  { %s272_s21 = scalar_lea.vmem %s31_s20, 512  ;;  %p277_p6 = scmp.lt.s32.totalorder %s31_s20, %s31_s20 }
  0x12   :  { %p273_p5 = scmp.ne.s32.totalorder %s31_s20, %s272_s21  ;;  %p278_p7 = scmp.lt.s32.totalorder %s272_s21, %s272_s21 }
  0x14   :  { %p279_p8 = por %p278_p7, %p277_p6 }
  0x16   :  { %p280_p9 = pnand %p279_p8, %p273_p5 }
  0x18   :  { %283 = shalt.err (!%p280_p9)
}
  0x19   :  { %36 = dma.hbm_to_vmem [thread:$0]  %s436_s1, 512, %s31_s20, [#allocation6], %s333_s15, %s333_s15, %s334_s16  }
  0x1a   :  { %324 = dma.done.wait [#allocation3], 512  }
  0x1b   :  { %325 = vsyncadd [#allocation3], 4294966784 }
  0x1c   :  { %326 = dma.done.wait [#allocation6], 512  }
  0x1d   :  { %327 = vsyncadd [#allocation6], 4294966784  ;;  %v371_v0 = vld [vmem:[#allocation2] sm:$0xff]  ;;  %v373_v1 = vld [vmem:[#allocation2 + $0x8] sm:$0xff]  ;;  %s336_s0 = smov [#allocation8]   ;;  %v337_v17 = vmov 0.0  }
  0x1e   :  { %v67_v2 = vand.u32 2147483647, %v371_v0  ;;  %v376_v3 = vld [vmem:[#allocation2 + $0x10] sm:$0xff]  ;;  %v68_v4 = vand.u32 2147483647, %v373_v1  ;;  %v379_v5 = vld [vmem:[#allocation5] sm:$0xff] }
  0x1f   :  { %v381_v7 = vld [vmem:[#allocation5 + $0x8] sm:$0xff]  ;;  %v383_v8 = vld [vmem:[#allocation2 + $0x18] sm:$0xff]  ;;  %vm51_vm0 = vcmp.ne.f32.partialorder %v379_v5, 255.0  ;;  %v387_v10 = vld [vmem:[#allocation5 + $0x10] sm:$0xff]  ;;  %v69_v11 = vand.u32 2147483647, %v376_v3 }
  0x20   :  { %v71_v6 = vsub.f32 0.0, %v67_v2  ;;  %vm52_vm1 = vcmp.ne.f32.partialorder %v381_v7, 255.0  ;;  %v72_v9 = vsub.f32 0.0, %v68_v4  ;;  %vm53_vm2 = vcmp.ne.f32.partialorder %v387_v10, 255.0  ;;  %v391_v13 = vld [vmem:[#allocation5 + $0x18] sm:$0xff]  ;;  %s192_s1 = sshll.u32 %s336_s0, 4  ;;  %s193_s1 = int_to_ptr.vmem [resolvable:$true] %s192_s1 }
  0x21   :  { %v73_v15 = vsub.f32 0.0, %v69_v11  ;;  %vm54_vm3 = vcmp.ne.f32.partialorder %v391_v13, 255.0  ;;  %v70_v16 = vand.u32 2147483647, %v383_v8  ;;  %v209_v18 = vsel %vm51_vm0, 1.0, %v337_v17  ;;  %s284_s24 = scalar_lea.vmem %s193_s1, 512  ;;  %p289_p11 = scmp.lt.s32.totalorder %s193_s1, %s193_s1 }
  0x22   :  { %v75_v12 = vmul.f32 1.442695, %v71_v6  ;;  %v77_v14 = vmul.f32 1.442695, %v72_v9  ;;  %v210_v19 = vsel %vm52_vm1, 1.0, %v337_v17  ;;  %171 = vst [vmem:[#allocation8] sm:$0xff] %v209_v18  ;;  %p285_p10 = scmp.ne.s32.totalorder %s193_s1, %s284_s24  ;;  %p290_p12 = scmp.lt.s32.totalorder %s284_s24, %s284_s24 }
  0x23   :  { %v79_v20 = vmul.f32 1.442695, %v73_v15  ;;  %v74_v21 = vsub.f32 0.0, %v70_v16  ;;  %172 = vst [vmem:[#allocation8 + $0x8] sm:$0xff] %v210_v19  ;;  %v211_v22 = vsel %vm53_vm2, 1.0, %v337_v17  ;;  %v212_v23 = vsel %vm54_vm3, 1.0, %v337_v17 }
  0x24   :  { %220 = vpow2.f32 %v75_v12  ;;  %173 = vst [vmem:[#allocation8 + $0x10] sm:$0xff] %v211_v22  ;;  %174 = vst [vmem:[#allocation8 + $0x18] sm:$0xff] %v212_v23  ;;  %p291_p13 = por %p290_p12, %p289_p11 }
  0x25   :  { %222 = vpow2.f32 %v77_v14  ;;  %v81_v24 = vmul.f32 1.442695, %v74_v21 }
  0x26   :  { %224 = vpow2.f32 %v79_v20  ;;  %p292_p0 = pnand %p291_p13, %p285_p10 }
  0x28   :  { %295 = shalt.err (!%p292_p0)
}
  0x29   :  { %198 = dma.vmem_to_hbm [thread:$0]  %s193_s1, 512, %s438_s3, [#allocation9], %s333_s15, %s333_s15, %s334_s16   ;;  %226 = vpow2.f32 %v81_v24  ;;  %v55_v35 = vmax.f32 %v371_v0, 0.0  ;;  %v59_v36 = vmul.f32 %v379_v5, %v371_v0  ;;  %v56_v39 = vmax.f32 %v373_v1, 0.0 }
  0x2a   :  { %v60_v40 = vmul.f32 %v381_v7, %v373_v1  ;;  %v57_v46 = vmax.f32 %v376_v3, 0.0  ;;  %v61_v50 = vmul.f32 %v387_v10, %v376_v3  ;;  %v58_v54 = vmax.f32 %v383_v8, 0.0  ;;  %s338_s3 = smov [#allocation7]  }
  0x2b   :  { %v63_v45 = vsub.f32 %v55_v35, %v59_v36  ;;  %v62_v58 = vmul.f32 %v391_v13, %v383_v8  ;;  %s180_s27 = sshll.u32 %s338_s3, 4  ;;  %s181_s27 = int_to_ptr.vmem [resolvable:$true] %s180_s27 }
  0x2c   :  { %v64_v49 = vsub.f32 %v56_v39, %v60_v40  ;;  %v65_v0 = vsub.f32 %v57_v46, %v61_v50  ;;  %s304_s28 = scalar_lea.vmem %s181_s27, 512  ;;  %p309_p2 = scmp.lt.s32.totalorder %s181_s27, %s181_s27 }
  0x2d   :  { %v66_v11 = vsub.f32 %v58_v54, %v62_v58  ;;  %p305_p1 = scmp.ne.s32.totalorder %s181_s27, %s304_s28  ;;  %p310_p3 = scmp.lt.s32.totalorder %s304_s28, %s304_s28 }
  0x2f   :  { %p311_p4 = por %p310_p3, %p309_p2 }
  0x31   :  { %v221_v25 = vpop.eup %220  ;;  %p312_p5 = pnand %p311_p4, %p305_p1 }
  0x32   :  { %v223_v26 = vpop.eup %222  ;;  %v83_v27 = vadd.f32 1.0, %v221_v25  ;;  %v86_v33 = vmul.f32 -0.5, %v221_v25  ;;  %v89_v41 = vand.u32 2147483647, %v221_v25 }
  0x33   :  { %v92_v28 = vadd.f32 1.0, %v223_v26  ;;  %v225_v29 = vpop.eup %224  ;;  %v95_v34 = vmul.f32 -0.5, %v223_v26  ;;  %v98_v44 = vand.u32 2147483647, %v223_v26 }
  0x34   :  { %228 = vlog2.f32 %v83_v27  ;;  %v101_v30 = vadd.f32 1.0, %v225_v29  ;;  %v104_v37 = vmul.f32 -0.5, %v225_v29  ;;  %v87_v38 = vadd.f32 1.0, %v86_v33 }
  0x35   :  { %230 = vlog2.f32 %v92_v28  ;;  %v96_v42 = vadd.f32 1.0, %v95_v34  ;;  %v107_v51 = vand.u32 2147483647, %v225_v29  ;;  %vm90_vm4 = vcmp.lt.f32.partialorder %v89_v41, 0.0004427343 }
  0x36   :  { %v227_v31 = vpop.eup %226  ;;  %232 = vlog2.f32 %v101_v30  ;;  %v105_v47 = vadd.f32 1.0, %v104_v37  ;;  %v88_v48 = vmul.f32 %v221_v25, %v87_v38  ;;  %vm99_vm5 = vcmp.lt.f32.partialorder %v98_v44, 0.0004427343 }
  0x37   :  { %v110_v32 = vadd.f32 1.0, %v227_v31  ;;  %v113_v43 = vmul.f32 -0.5, %v227_v31  ;;  %v97_v53 = vmul.f32 %v223_v26, %v96_v42  ;;  %v116_v59 = vand.u32 2147483647, %v227_v31 }
  0x38   :  { %v106_v61 = vmul.f32 %v225_v29, %v105_v47  ;;  %vm108_vm6 = vcmp.lt.f32.partialorder %v107_v51, 0.0004427343 }
  0x39   :  { %234 = vlog2.f32 %v110_v32  ;;  %v114_v55 = vadd.f32 1.0, %v113_v43  ;;  %vm117_vm7 = vcmp.lt.f32.partialorder %v116_v59, 0.0004427343 }
  0x3b   :  { %v115_v4 = vmul.f32 %v227_v31, %v114_v55 }
  0x41   :  { %v229_v52 = vpop.eup %228 }
  0x42   :  { %v231_v56 = vpop.eup %230  ;;  %v85_v57 = vmul.f32 0.6931472, %v229_v52 }
  0x43   :  { %v94_v60 = vmul.f32 0.6931472, %v231_v56  ;;  %v233_v62 = vpop.eup %232 }
  0x44   :  { %v91_v63 = vsel %vm90_vm4, %v88_v48, %v85_v57  ;;  %v103_v3 = vmul.f32 0.6931472, %v233_v62 }
  0x45   :  { %v119_v1 = vadd.f32 %v91_v63, %v63_v45  ;;  %v100_v2 = vsel %vm99_vm5, %v97_v53, %v94_v60 }
  0x46   :  { %v235_v6 = vpop.eup %234  ;;  %v120_v9 = vadd.f32 %v100_v2, %v64_v49  ;;  %v109_v14 = vsel %vm108_vm6, %v106_v61, %v103_v3 }
  0x47   :  { %v123_v12 = vsub.f32 0.0, %v119_v1  ;;  %v112_v15 = vmul.f32 0.6931472, %v235_v6  ;;  %v121_v8 = vadd.f32 %v109_v14, %v65_v0 }
  0x48   :  { %v124_v16 = vsub.f32 0.0, %v120_v9 }
  0x49   :  { %v127_v17 = vmul.f32 1.442695, %v123_v12  ;;  %v118_v18 = vsel %vm117_vm7, %v115_v4, %v112_v15  ;;  %v125_v20 = vsub.f32 0.0, %v121_v8 }
  0x4a   :  { %v129_v19 = vmul.f32 1.442695, %v124_v16  ;;  %v122_v21 = vadd.f32 %v118_v18, %v66_v11 }
  0x4b   :  { %236 = vpow2.f32 %v127_v17  ;;  %v131_v22 = vmul.f32 1.442695, %v125_v20 }
  0x4c   :  { %238 = vpow2.f32 %v129_v19  ;;  %v126_v23 = vsub.f32 0.0, %v122_v21 }
  0x4d   :  { %240 = vpow2.f32 %v131_v22 }
  0x4e   :  { %v133_v24 = vmul.f32 1.442695, %v126_v23 }
  0x50   :  { %242 = vpow2.f32 %v133_v24 }
  0x58   :  { %v237_v25 = vpop.eup %236 }
  0x59   :  { %v239_v26 = vpop.eup %238  ;;  %v135_v27 = vsub.f32 1.0, %v237_v25 }
  0x5a   :  { %v136_v28 = vsub.f32 1.0, %v239_v26  ;;  %v241_v29 = vpop.eup %240 }
  0x5b   :  { %v139_v30 = vmul.f32 %v135_v27, %v135_v27  ;;  %v137_v32 = vsub.f32 1.0, %v241_v29 }
  0x5c   :  { %v140_v31 = vmul.f32 %v136_v28, %v136_v28 }
  0x5d   :  { %v243_v33 = vpop.eup %242  ;;  %v143_v34 = vmul.f32 %v139_v30, %v119_v1  ;;  %v141_v36 = vmul.f32 %v137_v32, %v137_v32 }
  0x5e   :  { %v144_v35 = vmul.f32 %v140_v31, %v120_v9  ;;  %v138_v37 = vsub.f32 1.0, %v243_v33 }
  0x5f   :  { %v147_v38 = vsel %vm51_vm0, %v143_v34, 0.0  ;;  %v145_v40 = vmul.f32 %v141_v36, %v121_v8 }
  0x60   :  { %167 = vst [vmem:[#allocation7] sm:$0xff] %v147_v38  ;;  %v148_v39 = vsel %vm52_vm1, %v144_v35, 0.0  ;;  %v142_v41 = vmul.f32 %v138_v37, %v138_v37 }
  0x61   :  { %168 = vst [vmem:[#allocation7 + $0x8] sm:$0xff] %v148_v39  ;;  %v149_v42 = vsel %vm53_vm2, %v145_v40, 0.0 }
  0x62   :  { %v146_v43 = vmul.f32 %v142_v41, %v122_v21  ;;  %169 = vst [vmem:[#allocation7 + $0x10] sm:$0xff] %v149_v42 }
  0x64   :  { %v150_v44 = vsel %vm54_vm3, %v146_v43, 0.0 }
  0x65   :  { %170 = vst [vmem:[#allocation7 + $0x18] sm:$0xff] %v150_v44 }
  0x66   :  { %315 = shalt.err (!%p312_p5)
}
  0x67   :  { %186 = dma.vmem_to_hbm [thread:$0]  %s181_s27, 512, %s437_s2, [#allocation4], %s333_s15, %s333_s15, %s334_s16  }
  0x68   :  { %328 = dma.done.wait [#allocation4], 512  }
  0x69   :  { %329 = vsyncadd [#allocation4], 4294966784 }
  0x6a   :  { %330 = dma.done.wait [#allocation9], 512  }
  0x6b   :  { %331 = vsyncadd [#allocation9], 4294966784 }
  0x6c   :  { %205 = vsyncpa [#allocation3], 1 }
  0x6d   :  { %206 = vsyncpa [#allocation6], 1 }
  0x6e   :  { %207 = vsyncpa [#allocation4], 1 }
  0x6f   :  { %208 = vsyncpa [#allocation9], 1 }

</bundles_post_ra>
